<compile_context>
chip_gen: v6e
topology: v6e:2x2x1
jax: 0.10.0
libtpu: 0.0.40
codegen_flags: <defaults>
</compile_context>

<pallas_src>
import functools

import jax
import jax.numpy as jnp
from jax import lax
from jax.experimental import pallas as pl
from jax.experimental.pallas import tpu as pltpu

BN_EPS = 1e-5


def _vmem_budget():
    """Generation-aware VMEM limits (v5e/v6e: 128 MiB, v7x: 64 MiB per TC)."""
    try:
        cap = int(pltpu.get_tpu_info().vmem_capacity_bytes)
    except Exception:
        cap = 64 * 1024 * 1024                    # conservative fallback = v7x per-TC VMEM
    limit = min((cap * 3) // 4, 96 * 1024 * 1024)  # 96 MiB on v5e/v6e, 48 MiB on v7x
    tile_budget = limit // 3                       # headroom for weights + pipeline buffers
    return limit, tile_budget


def _pick_tile_hw(hw, cin, cout, in_itemsize, out_itemsize, tile_budget):
    """Largest lane-aligned (multiple of 128) HW tile <= HW fitting the double-buffer budget."""
    if hw < 128:
        return hw                                  # tiny spatial extent: one full-width block
    t = min(2048, (hw // 128) * 128)
    per_col = 2 * (cin * in_itemsize + cout * out_itemsize)   # 2 buffers x (in tile + out tile)
    while t > 128 and per_col * t > tile_budget:
        t -= 128
    return t


def _stats_kernel(x_ref, sx_ref, g_ref, *, hw, tile, need_mask):
    """Pass 1: per-batch-element x-moments  sx += sum_j x_j,  G += x @ x^T (contraction over T)."""
    @pl.when(pl.program_id(1) == 0)
    def _init():
        sx_ref[...] = jnp.zeros_like(sx_ref)
        g_ref[...] = jnp.zeros_like(g_ref)

    x = x_ref[0].astype(jnp.float32)                               # (Cin, T)
    if need_mask:                                                  # cdiv edge tile: zero OOB cols
        col = pl.program_id(1) * tile + lax.broadcasted_iota(jnp.int32, x.shape, 1)
        x = jnp.where(col < hw, x, 0.0)
    sx_ref[0] += jnp.sum(x, axis=1, keepdims=True)                 # (Cin, 1)
    g_ref[0] += lax.dot_general(                                   # (Cin, Cin) on the MXU
        x, x, (((1,), (1,)), ((), ())), preferred_element_type=jnp.float32)


def _stream_kernel(x_ref, w_ref, shift_ref, o_ref):
    """Pass 2: y = (scale-folded W) @ x, + shift, ReLU; lane-dense output tile."""
    y = jnp.dot(w_ref[...], x_ref[0], preferred_element_type=jnp.float32)   # (Cout, T) f32
    o_ref[0] = jnp.maximum(y + shift_ref[...], 0.0).astype(o_ref.dtype)


def convbnrelu_forward(x_nchw, w_oi, gamma, beta):
    """x_nchw: (N,Cin,H,W); w_oi: (Cout,Cin) or (Cout,Cin,1,1); gamma/beta: (Cout,)."""
    N, Cin, H, W = x_nchw.shape
    Cout = w_oi.shape[0]
    HW = H * W
    M = N * HW
    io_dtype = x_nchw.dtype                        # bf16 in -> bf16 out (halves HBM traffic)

    x3d = x_nchw.reshape(N, Cin, HW)               # pure view of NCHW: no transpose
    w2d = w_oi.reshape(Cout, -1).astype(jnp.float32)   # (Cout, Cin)

    vmem_limit, tile_budget = _vmem_budget()
    itemsize = jnp.dtype(io_dtype).itemsize
    T = _pick_tile_hw(HW, Cin, Cout, itemsize, itemsize, tile_budget)
    n_t = pl.cdiv(HW, T)

    # ---- pass 1: weight-free x-moments (per-N partials, megacore-shardable on v7x) ----
    sx_p, g_p = pl.pallas_call(
        functools.partial(_stats_kernel, hw=HW, tile=T, need_mask=(HW % T != 0)),
        out_shape=(jax.ShapeDtypeStruct((N, Cin, 1), jnp.float32),
                   jax.ShapeDtypeStruct((N, Cin, Cin), jnp.float32)),
        grid_spec=pltpu.PrefetchScalarGridSpec(
            num_scalar_prefetch=0,
            grid=(N, n_t),
            in_specs=[pl.BlockSpec((1, Cin, T), lambda n, t: (n, 0, t))],
            out_specs=[pl.BlockSpec((1, Cin, 1), lambda n, t: (n, 0, 0)),
                       pl.BlockSpec((1, Cin, Cin), lambda n, t: (n, 0, 0))],
        ),
        compiler_params=pltpu.CompilerParams(
            dimension_semantics=("parallel", "arbitrary"),
            vmem_limit_bytes=vmem_limit),
    )(x3d)

    sx = jnp.sum(sx_p, axis=0)                     # (Cin, 1)
    G = jnp.sum(g_p, axis=0)                       # (Cin, Cin)

    # ---- fold BN into per-channel scale/shift; fold scale into the conv weight -------
    ysum = w2d @ sx                                         # (Cout, 1)
    ysq = jnp.sum((w2d @ G) * w2d, axis=1, keepdims=True)   # diag(W G W^T), (Cout, 1)
    mean = ysum / M
    var = jnp.maximum(ysq / M - mean * mean, 0.0)           # biased var (training-mode BN)
    scale = gamma.reshape(Cout, 1).astype(jnp.float32) / jnp.sqrt(var + BN_EPS)
    shift = beta.reshape(Cout, 1).astype(jnp.float32) - mean * scale
    w_scaled = w2d * scale                                  # BN scale rides the MXU for free
    if io_dtype == jnp.bfloat16:
        w_scaled = w_scaled.astype(jnp.bfloat16)            # native bf16 MXU path

    # ---- pass 2: stream conv(+scale) + shift + ReLU -----------------------------------
    out3d = pl.pallas_call(
        _stream_kernel,
        out_shape=jax.ShapeDtypeStruct((N, Cout, HW), io_dtype),
        grid_spec=pltpu.PrefetchScalarGridSpec(
            num_scalar_prefetch=0,
            grid=(N, n_t),
            in_specs=[
                pl.BlockSpec((1, Cin, T), lambda n, t: (n, 0, t)),
                pl.BlockSpec((Cout, Cin), lambda n, t: (0, 0)),
                pl.BlockSpec((Cout, 1), lambda n, t: (0, 0)),
            ],
            out_specs=pl.BlockSpec((1, Cout, T), lambda n, t: (n, 0, t)),
        ),
        compiler_params=pltpu.CompilerParams(
            dimension_semantics=("parallel", "parallel"),
            vmem_limit_bytes=vmem_limit),
    )(x3d, w_scaled, shift)

    return out3d.reshape(N, Cout, H, W)


def _reference(x_nchw, w_oi, gamma, beta):
    # pure-JAX reference: Conv2d(1x1, bias=False) -> BatchNorm2d(train) -> ReLU
    N, Cin, H, W = x_nchw.shape
    Cout = w_oi.shape[0]
    x2d = jnp.transpose(x_nchw.astype(jnp.float32), (0, 2, 3, 1)).reshape(-1, Cin)
    y = x2d @ w_oi.reshape(Cout, -1).T
    mean = y.mean(axis=0, keepdims=True)
    var = ((y - mean) ** 2).mean(axis=0, keepdims=True)
    out = (y - mean) / jnp.sqrt(var + BN_EPS) * gamma[None, :] + beta[None, :]
    out = jnp.maximum(out, 0.0)
    return jnp.transpose(out.reshape(N, H, W, Cout), (0, 3, 1, 2))


if __name__ == "__main__":
    key = jax.random.PRNGKey(0)
    kx, kw, kg, kb = jax.random.split(key, 4)

    configs = [
        # (N, Cin, H, W, Cout, io dtype, tolerance)
        (2, 4, 16, 16, 8, jnp.float32, 2e-4),    # HW=256: single lane-aligned tile
        (2, 4, 14, 14, 8, jnp.float32, 2e-4),    # HW=196: exercises cdiv edge-tile masking
        (2, 4, 16, 16, 8, jnp.bfloat16, 5e-2),   # bf16 I/O path (halved HBM bytes)
    ]

    for (N, Cin, H, W, Cout, dt, tol) in configs:
        x = jax.random.normal(kx, (N, Cin, H, W), dtype=jnp.float32)
        # Conv2d(in, out, k=1, bias=False) weight (Cout, Cin, 1, 1) flattened to (Cout, Cin)
        w = jax.random.normal(kw, (Cout, Cin), dtype=jnp.float32) * 0.1
        gamma = jnp.abs(jax.random.normal(kg, (Cout,), dtype=jnp.float32)) + 0.5
        beta = jax.random.normal(kb, (Cout,), dtype=jnp.float32) * 0.1

        x_in = x.astype(dt)
        out = convbnrelu_forward(x_in, w, gamma, beta)
        out = jax.block_until_ready(out)

        ref = _reference(x_in.astype(jnp.float32), w, gamma, beta)
        assert out.shape == (N, Cout, H, W)
        assert out.dtype == jnp.dtype(dt)
        assert jnp.allclose(out.astype(jnp.float32), ref, atol=tol, rtol=tol), (
            f"mismatch vs reference (dtype={dt}, HW={H * W})")

    print("KERNEL_OK")
</pallas_src>

<mosaic_0001>
module attributes {stable_mosaic.version = 11 : i64} {
  func.func @_stats_kernel(%arg0: i32, %arg1: i32, %arg2: memref<1x4x256xf32, #tpu.memory_space<vmem>>, %arg3: memref<1x4x1xf32, #tpu.memory_space<vmem>>, %arg4: memref<1x4x4xf32, #tpu.memory_space<vmem>>) attributes {dimension_semantics = [#tpu.dimension_semantics<parallel>, #tpu.dimension_semantics<arbitrary>], iteration_bounds = array<i64: 2, 1>, scalar_prefetch = 0 : i64, scratch_operands = 0 : i64, tpu.core_type = #tpu.core_type<tc>, window_params = [{transform_indices = @transform_0, window_bounds = array<i64: 1, 4, 256>}, {transform_indices = @transform_1, window_bounds = array<i64: 1, 4, 1>}, {transform_indices = @transform_2, window_bounds = array<i64: 1, 4, 4>}]} {
    %c0_i32 = arith.constant 0 : i32
    %0 = arith.cmpi eq, %arg1, %c0_i32 : i32
    %1 = arith.extui %0 : i1 to i32
    %c0_i32_0 = arith.constant 0 : i32
    %2 = arith.cmpi ne, %1, %c0_i32_0 : i32
    scf.if %2 {
      %cst_16 = arith.constant 0.000000e+00 : f32
      %20 = vector.broadcast %cst_16 : f32 to vector<1x4x1xf32>
      %c0_17 = arith.constant 0 : index
      %c0_18 = arith.constant 0 : index
      %c0_19 = arith.constant 0 : index
      %21 = vector.load %arg3[%c0_17, %c0_18, %c0_19] : memref<1x4x1xf32, #tpu.memory_space<vmem>>, vector<1x4x1xf32>
      tpu.vector_store %arg3[%c0_17, %c0_18, %c0_19], %20 {strides = array<i32>} : memref<1x4x1xf32, #tpu.memory_space<vmem>>, vector<1x4x1xf32>,
      %cst_20 = arith.constant 0.000000e+00 : f32
      %22 = vector.broadcast %cst_20 : f32 to vector<1x4x4xf32>
      %c0_21 = arith.constant 0 : index
      %c0_22 = arith.constant 0 : index
      %c0_23 = arith.constant 0 : index
      %23 = vector.load %arg4[%c0_21, %c0_22, %c0_23] : memref<1x4x4xf32, #tpu.memory_space<vmem>>, vector<1x4x4xf32>
      tpu.vector_store %arg4[%c0_21, %c0_22, %c0_23], %22 {strides = array<i32>} : memref<1x4x4xf32, #tpu.memory_space<vmem>>, vector<1x4x4xf32>,
    } else {
    }
    %c0 = arith.constant 0 : index
    %c0_1 = arith.constant 0 : index
    %c0_2 = arith.constant 0 : index
    %3 = vector.load %arg2[%c0, %c0_1, %c0_2] : memref<1x4x256xf32, #tpu.memory_space<vmem>>, vector<1x4x256xf32>
    %4 = vector.shape_cast %3 : vector<1x4x256xf32> to vector<4x256xf32>
    %c0_3 = arith.constant 0 : index
    %c0_4 = arith.constant 0 : index
    %c0_5 = arith.constant 0 : index
    %5 = vector.load %arg3[%c0_3, %c0_4, %c0_5] : memref<1x4x1xf32, #tpu.memory_space<vmem>>, vector<1x4x1xf32>
    %6 = vector.shape_cast %5 : vector<1x4x1xf32> to vector<4x1xf32>
    %cst = arith.constant dense<0.000000e+00> : vector<4xf32>
    %7 = vector.multi_reduction <add>, %4, %cst [1] : vector<4x256xf32> to vector<4xf32>
    %8 = vector.shape_cast %7 : vector<4xf32> to vector<4x1xf32>
    %9 = arith.addf %6, %8 : vector<4x1xf32>
    %c0_6 = arith.constant 0 : index
    %c0_7 = arith.constant 0 : index
    %c0_8 = arith.constant 0 : index
    %10 = vector.load %arg3[%c0_6, %c0_7, %c0_8] : memref<1x4x1xf32, #tpu.memory_space<vmem>>, vector<1x4x1xf32>
    %11 = vector.shape_cast %10 : vector<1x4x1xf32> to vector<4x1xf32>
    %12 = vector.shape_cast %9 : vector<4x1xf32> to vector<1x4x1xf32>
    tpu.vector_store %arg3[%c0_6, %c0_7, %c0_8], %12 {strides = array<i32>} : memref<1x4x1xf32, #tpu.memory_space<vmem>>, vector<1x4x1xf32>,
    %c0_9 = arith.constant 0 : index
    %c0_10 = arith.constant 0 : index
    %c0_11 = arith.constant 0 : index
    %13 = vector.load %arg4[%c0_9, %c0_10, %c0_11] : memref<1x4x4xf32, #tpu.memory_space<vmem>>, vector<1x4x4xf32>
    %14 = vector.shape_cast %13 : vector<1x4x4xf32> to vector<4x4xf32>
    %cst_12 = arith.constant dense<0.000000e+00> : vector<4x4xf32>
    %15 = tpu.matmul %4, %4, %cst_12 {dimension_numbers = #tpu.dot_dimension_numbers<[1], [1], [0], [0], [0, 0, 1, 0], [], []>} : vector<4x256xf32>, vector<4x256xf32>, vector<4x4xf32> -> vector<4x4xf32>
    %16 = arith.addf %14, %15 : vector<4x4xf32>
    %c0_13 = arith.constant 0 : index
    %c0_14 = arith.constant 0 : index
    %c0_15 = arith.constant 0 : index
    %17 = vector.load %arg4[%c0_13, %c0_14, %c0_15] : memref<1x4x4xf32, #tpu.memory_space<vmem>>, vector<1x4x4xf32>
    %18 = vector.shape_cast %17 : vector<1x4x4xf32> to vector<4x4xf32>
    %19 = vector.shape_cast %16 : vector<4x4xf32> to vector<1x4x4xf32>
    tpu.vector_store %arg4[%c0_13, %c0_14, %c0_15], %19 {strides = array<i32>} : memref<1x4x4xf32, #tpu.memory_space<vmem>>, vector<1x4x4xf32>,
    return
  }
  func.func @transform_0(%arg0: i32, %arg1: i32) -> (i32, i32, i32) {
    %c0_i32 = arith.constant 0 : i32
    %c0_i32_0 = arith.constant 0 : i32
    return %arg0, %c0_i32, %arg1 : i32, i32, i32
  }
  func.func @transform_1(%arg0: i32, %arg1: i32) -> (i32, i32, i32) {
    %c0_i32 = arith.constant 0 : i32
    %c0_i32_0 = arith.constant 0 : i32
    %c0_i32_1 = arith.constant 0 : i32
    return %arg0, %c0_i32, %c0_i32_0 : i32, i32, i32
  }
  func.func @transform_2(%arg0: i32, %arg1: i32) -> (i32, i32, i32) {
    %c0_i32 = arith.constant 0 : i32
    %c0_i32_0 = arith.constant 0 : i32
    %c0_i32_1 = arith.constant 0 : i32
    return %arg0, %c0_i32, %c0_i32_0 : i32, i32, i32
  }
}

</mosaic_0001>

<bundles_post_ra>
// kernel: tpu_custom_call.1
= control target key start
LH: loop header
LB: loop body
LE: loop exit
PB: predicated region body
PF: predicated region fallthrough
CT: control target
= control target key end

     0   :  { %8 = vsyncpa [#allocation3], 0  ;;  %s772_s0 = inlined_call_operand.hbm [shape: f32[2,4,256], index: 0, kind: input, shape index: {}]   ;;  %s773_s1 = inlined_call_operand.vmem [shape: f32[2,4,1], index: 1, kind: output, shape index: {0}]   ;;  %s774_s2 = inlined_call_operand.hbm [shape: f32[2,4,4], index: 2, kind: output, shape index: {1}]  }
   0x1   :  { %10 = vsyncpa [#allocation3 + $0x1], 0 }
   0x2   :  { %11 = vsyncpa [#allocation4], 0 }
   0x3   :  { %13 = vsyncpa [#allocation4 + $0x1], 0  ;;  %s618_s9 = smov 0   ;;  %s620_s10 = smov 0  }
   0x4   :  { %s622_s11 = smov 0   ;;  %s624_s12 = smov 0  }
   0x5   :  { %s626_s13 = smov 0   ;;  %s628_s14 = smov 0  }
   0x6 LB: > { %s410_s15 = sadd.s32 4294967295, %s598_s14   ;;  %s411_s16 = sadd.s32 4294967294, %s598_s14   ;;  %s598_s14 = sphi %s628_s14, %s19_s14   ;;  %s594_s13 = sphi %s626_s13, %s786_s13   ;;  %s590_s12 = sphi %s624_s12, %s785_s12   ;;  %s586_s11 = sphi %s622_s11, %s784_s11   ;;  %s582_s10 = sphi %s620_s10, %s783_s10   ;;  %s578_s9 = sphi %s618_s9, %s782_s9  }
   0x7   : > { %s31_s17 = sadd.s32 1, %s594_s13  ;;  %s40_s18 = sadd.s32 1, %s586_s11 }
   0x8   : > { %p33_p0 = scmp.ge.s32.totalorder %s31_s17, 2  ;;  %p47_p1 = scmp.ne.s32.totalorder %s586_s11, %s582_s10 }
   0x9   : > { %p48_p2 = scmp.eq.s32.totalorder %s598_s14, 0  ;;  %p53_p3 = scmp.ne.s32.totalorder %s582_s10, %s578_s9 }
   0xa   : > { %s788_s17 = smov (%p33_p0, %s31_s17), 0  ;;  %p54_p5 = scmp.eq.s32.totalorder %s410_s15, 0 }
   0xb   : > { %p659_p4 = por %p48_p2, %p47_p1  ;;  %s35_s20 = ssub.s32 %s594_s13, %s788_s17 }
   0xc   : > { %p103_p6 = scmp.eq.s32.totalorder %s410_s15, 1  ;;  %p38_p7 = scmp.eq.s32.totalorder %s35_s20, 0 }
   0xd   : > { %p665_p8 = por %p54_p5, %p53_p3  ;;  %p109_p10 = scmp.eq.s32.totalorder %s411_s16, 1 }
   0xe   : > { %p669_p9 = por %p103_p6, %p47_p1  ;;  %p438_p13 = scmp.lt.s32.totalorder %s598_s14, 2 }
   0xf   : > { %s674_s23 = scalar_select %p38_p7, %s586_s11, %s40_s18  }
  0x10   : > { %p676_p11 = por %p109_p10, %p53_p3  ;;  %s129_s25 = sand.u32 1, %s586_s11  }
  0x11   : > { %s414_s26 = sshll.u32 %s129_s25, 3  ;;  %s425_s27 = sshll.u32 %s594_s13, 7 }
  0x12   : > { %s778_s24 = scalar_select %p676_p11, 1, 0 }
  0x13   : > { %s141_s30 = scalar_lea.hbm %s772_s0, %s425_s27  ;;  %s133_s3 = scalar_lea.vmem [#allocation2], %s414_s26 }
  0x14   : > { %s143_s4 = sshll.u32 %s133_s3, 4  ;;  %p689_p0 = pnand %p438_p13, %p659_p4  ;;  %s144_s4 = int_to_ptr.vmem [resolvable:$true] %s143_s4 }
  0x15   : > { %p417_p1 = scmp.ge.s32.totalorder %s598_s14, 1  ;;  %p148_p2 = scmp.lt.s32.totalorder %s598_s14, 3 }
  0x16   : > { %s130_s6 = scalar_lea.sflag [#allocation3], %s129_s25  ;;  %p492_p3 = pneg %p689_p0 }
  0x17   : > { %s503_s7 = scalar_lea.vmem %s144_s4, 128  ;;  %s600_s8 = smov [#allocation2]  }
  0x18   : > { %p504_p5 = scmp.ne.s32.totalorder %s144_s4, %s503_s7  ;;  %s508_s15 = sshll.u32 %s600_s8, 4  ;;  %s509_s15 = int_to_ptr.vmem [resolvable:$false] %s508_s15 }
  0x19   : > { %s510_s16 = scalar_lea.vmem %s509_s15, 256  ;;  %p511_p10 = scmp.lt.s32.totalorder %s144_s4, %s509_s15 }
  0x1a   : > { %p506_p6 = pnand %p504_p5, %p492_p3  ;;  %p512_p12 = scmp.lt.s32.totalorder %s510_s16, %s503_s7 }
  0x1c   : > { %p507_p7 = pneg %p506_p6  ;;  %p513_p4 = por %p512_p12, %p511_p10 }
  0x1e   : > { %p514_p13 = pnand %p513_p4, %p507_p7 }
  0x20   : > { %517 = shalt.err (!%p514_p13)
}
  0x21   : > { %433 = dma.hbm_to_vmem [thread:$0]  (!%p689_p0), %s141_s30, 128, %s144_s4, %s130_s6  }
  0x22   : > { %p149_p11 = pnand %p417_p1, %p148_p2 }
  0x23   : > { %s704_s18 = sand.u32 (!%p149_p11), 1, %s582_s10  }
  0x24   : > { %152 = sbr.rel (%p149_p11) target bundleno = 257 (0x101), region = 24  ;;  %s418_s19 = sshll.u32 (!%p149_p11), %s704_s18, 3 }
  0x25   : > { %s155_s20 = scalar_lea.sflag (!%p149_p11), [#allocation3], %s704_s18  ;;  %s158_s25 = scalar_lea.vmem (!%p149_p11), [#allocation2], %s418_s19 }
  0x29   : > { %569 = dma.done.wait (%p665_p8), %s155_s20, 128  }
  0x2a   : > { %571 = vsyncadd (%p665_p8), %s155_s20, 4294967168  ;;  %s419_s26 = sshll.u32 %s704_s18, 2  ;;  %vm194_vm0 = vcmask 27648   ;;  %v601_v0 = vmov 0.0   ;;  %vm201_vm1 = vcmask 1043456   ;;  %v196_v1 = vld [vmem:[%s158_s25] sm:$0xff] }
  0x2b   : > { %s713_s27 = scalar_lea.vmem [#allocation5], %s419_s26  ;;  %v199_v2 = vcombine.high %v196_v1, %v196_v1  ;;  %v202_v3 = vsel %vm201_vm1, %v196_v1, 0.0  ;;  %p184_p8 = scmp.lt.s32.totalorder %s590_s12, 1  ;;  %vm192_vm2 = vcmask 3072  }
  0x2c   : > { %195 = vst.msk [vmem:[%s713_s27] sm:$0xf] %vm194_vm0, %v601_v0  ;;  %s422_s4 = sshll.u32 %s590_s12, 6  ;;  %s305_s5 = sshll.u32 %s713_s27, 4  ;;  %s306_s5 = int_to_ptr.vmem [resolvable:$true] %s305_s5 }
  0x2d   : > { %241 = vmatprep.subr.mxu0 %v199_v2  ;;  %275 = vmatprep.mubr.f32.mxu0 %v199_v2  ;;  %v203_v4 = vsel %vm201_vm1, %v199_v2, 0.0  ;;  %s185_s21 = scalar_select %p184_p8, %s590_s12, 1 }
  0x2e   : > { %242 = vmatpush1.xpose.msra.mxu0 %v196_v1  ;;  %v204_v5 = vadd.f32 %v203_v4, %v202_v3  ;;  %s728_s8 = scalar_lea.hbm %s774_s2, %s422_s4  ;;  %s289_s15 = scalar_lea.sflag [#allocation4], %s704_s18 }
  0x2f   : > { %s420_s28 = sshll.u32 %s185_s21, 2  ;;  %s518_s16 = scalar_lea.vmem %s306_s5, 64 }
  0x30   : > { %205 = vadd.xlane.f32.xlu0 %v204_v5  ;;  %s187_s3 = scalar_lea.vmem %s773_s1, %s420_s28  ;;  %p519_p11 = scmp.ne.s32.totalorder %s306_s5, %s518_s16 }
  0x31   : > { %276 = vmatmul.mubr.f32.vlgmr.msra.gmra.mxu0 %v196_v1  ;;  %193 = vst.msk [vmem:[%s187_s3] sm:$0xf] %vm192_vm2, %v601_v0  ;;  %s602_s19 = smov [#allocation5]  }
  0x32   : > { %p520_p12 = pnand %p519_p11, %p669_p9  ;;  %s522_s12 = sshll.u32 %s602_s19, 4  ;;  %s523_s12 = int_to_ptr.vmem [resolvable:$false] %s522_s12 }
  0x33   : > { %v210_v9 = vld [vmem:[%s713_s27] sm:$0xf]  ;;  %s524_s20 = scalar_lea.vmem %s523_s12, 128  ;;  %p525_p1 = scmp.lt.s32.totalorder %s306_s5, %s523_s12 }
  0x34   : > { %p521_p0 = pneg %p520_p12  ;;  %p526_p2 = scmp.lt.s32.totalorder %s524_s20, %s518_s16 }
  0x36   : > { %p527_p3 = por %p526_p2, %p525_p1 }
  0x38   : > { %v197_v6 = vld [vmem:[%s187_s3] sm:$0xf]  ;;  %p528_p5 = pnand %p527_p3, %p521_p0 }
  0xb9   : > { %v206_v7 = vpop.xlane.xlu0 %205 }
  0xba   : > { %v207_v8 = vadd.f32 %v206_v7, %v197_v6 }
  0xbc   : > { %209 = vst.msk [vmem:[%s187_s3] sm:$0xf] %vm192_vm2, %v207_v8 }
  0xf1   : > { %v277_v10 = vpop.f32.mrf.mxu0 }
  0xf2   : > { %v281_v11 = vadd.f32 %v277_v10, %v210_v9 }
  0xf3   : > { %v279_v12 = vpop.f32.mrf.mxu0 }
  0xf4   : > { %283 = vst.msk [vmem:[%s713_s27] sm:$0xf] %vm194_vm0, %v281_v11 }
  0xf5   : > { %531 = shalt.err (!%p528_p5)
}
  0xf6   : > { %s532_s25 = scalar_lea.hbm %s728_s8, 64  ;;  %s536_s27 = scalar_lea.hbm %s774_s2, 128 }
  0xf7   : > { %p533_p6 = scmp.ne.s32.totalorder %s728_s8, %s532_s25  ;;  %p537_p4 = scmp.lt.s32.totalorder %s728_s8, %s774_s2 }
  0xf8   : > { %p538_p13 = scmp.lt.s32.totalorder %s536_s27, %s532_s25 }
  0xf9   : > { %p534_p7 = pnand %p533_p6, %p669_p9 }
  0xfa   : > { %p539_p8 = por %p538_p13, %p537_p4 }
  0xfb   : > { %p535_p10 = pneg %p534_p7 }
  0xfd   : > { %p540_p11 = pnand %p539_p8, %p535_p10 }
  0xff   : > { %543 = shalt.err (!%p540_p11)
}
 0x100   : > { %428 = dma.vmem_to_hbm [thread:$0]  (%p669_p9), %s306_s5, 64, %s728_s8, %s289_s15  }
 0x101 PF: > { %s324_s29 = sand.u32 1, %s578_s9   ;;  %p780_p12 = scmp.ne.s32.totalorder %s778_s24, 0 }
 0x102   : > { %p781_p0 = scmp.ge.s32.totalorder %s598_s14, 2  ;;  %s325_s30 = scalar_lea.sflag [#allocation4], %s324_s29 }
 0x104   : > { %p435_p1 = pnand %p781_p0, %p780_p12 }
 0x106   : > { %p436_p2 = pneg %p435_p1 }
 0x108   : > { %573 = dma.done.wait (%p436_p2), %s325_s30, 64  }
 0x109   : > { %575 = vsyncadd (%p436_p2), %s325_s30, 4294967232  ;;  %s19_s14 = sadd.s32 1, %s598_s14   ;;  %s782_s9 = smov %s582_s10 }
 0x10a   : > { %p16_p3 = scmp.ge.s32.totalorder %s19_s14, 4   ;;  %s783_s10 = smov %s586_s11 }
 0x10b   : > { %s784_s11 = smov %s674_s23  ;;  %s785_s12 = smov %s594_s13 }
 0x10c   : > { %s786_s13 = smov %s788_s17  ;;  %18 = sbr.rel (!%p16_p3) target bundleno = 6 (0x6), region = 85 }
 0x111   :  { %330 = vsyncpa [#allocation3], 1 }
 0x112   :  { %332 = vsyncpa [#allocation3 + $0x1], 1 }
 0x113   :  { %333 = vsyncpa [#allocation4], 1 }
 0x114   :  { %335 = vsyncpa [#allocation4 + $0x1], 1 }

</bundles_post_ra>
